<compile_context>
chip_gen: v5e
topology: v5e:2x2
jax: 0.10.0
libtpu: 0.0.40
codegen_flags: <defaults>
</compile_context>

<pallas_src>
import functools

import jax
import jax.numpy as jnp
from jax.experimental import pallas as pl
from jax.experimental.pallas import tpu as pltpu


def _channel_attention_kernel(x_ref, w1_ref, w2_ref, out_ref,
                              sum_ref, max_ref, *,
                              hw_true, hw_tile, n_hw, n_b):
    # x_ref:   (b_tile, C, hw_tile)   native dtype
    # w1_ref:  (C, C//16)             float32  (fc1.weight[:, :, 0, 0].T)
    # w2_ref:  (C//16, C)             float32  (fc2.weight[:, :, 0, 0].T)
    # out_ref: (b_tile, C)            float32
    # sum_ref / max_ref: (b_tile, C, 128) f32 lane-partial accumulators
    hw_i = pl.program_id(1)
    n_groups = hw_tile // 128
    valid_last = hw_true - (n_hw - 1) * hw_tile   # in (0, hw_tile]

    @pl.when(hw_i == 0)
    def _init():
        sum_ref[...] = jnp.zeros_like(sum_ref)
        max_ref[...] = jnp.full_like(max_ref, -jnp.inf)

    x = x_ref[...]                                 # (b_tile, C, hw_tile)

    def accumulate(valid):
        # Fold the tile 128 lanes at a time (pure VPU add/max, no XLU).
        s = None
        m = None
        for j in range(n_groups):
            lo = j * 128
            sl = x[:, :, lo:lo + 128].astype(jnp.float32)
            # Sum: zero-padded lanes contribute 0 — never needs a mask.
            s = sl if s is None else s + sl
            # Max: mask only the (statically known) straddling lane group.
            if lo + 128 <= valid:
                msl = sl                            # fully valid group
            elif lo >= valid:
                msl = None                          # fully padded: skip for max
            else:
                lane = jax.lax.broadcasted_iota(jnp.int32, sl.shape, 2)
                msl = jnp.where(lane < (valid - lo), sl, -jnp.inf)
            if msl is not None:
                m = msl if m is None else jnp.maximum(m, msl)
        sum_ref[...] += s
        max_ref[...] = jnp.maximum(max_ref[...], m)

    if valid_last == hw_tile:
        # No ragged tile anywhere: single fast path.
        accumulate(hw_tile)
    else:
        @pl.when(hw_i < n_hw - 1)
        def _full():
            accumulate(hw_tile)

        @pl.when(hw_i == n_hw - 1)
        def _ragged():
            accumulate(valid_last)

    @pl.when(hw_i == n_hw - 1)
    def _finalize():
        # Single cross-lane reduce of the 128 lane-partials (XLU, once).
        avg = jnp.sum(sum_ref[...], axis=-1) * (1.0 / float(hw_true))  # (b, C)
        mx = jnp.max(max_ref[...], axis=-1)                            # (b, C)
        pooled = jnp.concatenate([avg, mx], axis=0)                    # (2b, C)
        hid = jnp.maximum(
            jnp.dot(pooled, w1_ref[...], preferred_element_type=jnp.float32),
            0.0)                                                       # (2b, h)
        o = jnp.dot(hid, w2_ref[...], preferred_element_type=jnp.float32)
        out_ref[...] = jax.nn.sigmoid(o[:n_b] + o[n_b:])               # (b, C)


def _physical_vmem_bytes():
    """Generation-aware VMEM capacity, conservative fallback (v7x per-TC)."""
    try:
        info = pltpu.get_tpu_info()
        phys = getattr(info, "vmem_capacity_bytes", None)
        if phys:
            return int(phys)
    except Exception:
        pass
    return 64 * 1024 * 1024


def channel_attention(x, w1, w2, *, hw_tile=None):
    """x: (B, C, H, W); w1: (C//16, C, 1, 1); w2: (C, C//16, 1, 1).

    Returns sigmoid(fc2(relu(fc1(avgpool(x)))) + fc2(relu(fc1(maxpool(x)))))
    with shape (B, C, 1, 1) in float32, matching the PyTorch module.
    """
    B, C, H, W = x.shape
    hidden = w1.shape[0]
    HW = H * W
    itemsize = jnp.dtype(x.dtype).itemsize

    # --- tile auto-sizing (block-byte target, generation-aware VMEM cap) ----
    phys_vmem = _physical_vmem_bytes()
    target_block_bytes = min(2 * 1024 * 1024, phys_vmem // 16)

    hw_pad128 = pl.cdiv(HW, 128) * 128
    if hw_tile is None:
        lanes_target = max(1, target_block_bytes // (C * itemsize * 128))
        # Cap the in-kernel lane-group unroll at 64 (8192 elements per row).
        lanes = max(1, min(lanes_target, 64, hw_pad128 // 128))
        hw_tile = lanes * 128
    else:
        hw_tile = max(128, (int(hw_tile) // 128) * 128)
        hw_tile = min(hw_tile, hw_pad128)
    hw_pad = pl.cdiv(HW, hw_tile) * hw_tile
    n_hw = hw_pad // hw_tile

    # Batch-block when the whole HW fits in one tile and the block is tiny.
    b_tile = 1
    if n_hw == 1 and B > 1:
        per_b = C * hw_tile * itemsize
        for cand in range(2, B + 1):
            if B % cand != 0:
                continue
            if cand * per_b > target_block_bytes:
                break
            if B >= 4 and (B // cand) < 2:
                break   # keep >=2 parallel batch blocks for megacore when possible
            b_tile = cand

    # --- prepare operands ---------------------------------------------------
    x3 = x.reshape(B, C, HW)
    if hw_pad != HW:
        # Zero pad: sum of padded lanes is exact; max is masked in-kernel.
        x3 = jnp.pad(x3, ((0, 0), (0, 0), (0, hw_pad - HW)))

    # 1x1 conv (no bias) on a (B, C, 1, 1) tensor == matmul with weight.T
    w1_t = w1[:, :, 0, 0].T.astype(jnp.float32)   # (C, hidden)
    w2_t = w2[:, :, 0, 0].T.astype(jnp.float32)   # (hidden, C)

    kernel = functools.partial(_channel_attention_kernel,
                               hw_true=HW, hw_tile=hw_tile,
                               n_hw=n_hw, n_b=b_tile)

    block_bytes = b_tile * C * hw_tile * itemsize
    vmem_limit = int(min(phys_vmem // 2,
                         max(32 * 1024 * 1024, 8 * block_bytes)))

    cost = pl.CostEstimate(
        flops=2 * B * C * HW + 8 * B * C * hidden,
        transcendentals=B * C,
        bytes_accessed=B * C * hw_pad * itemsize
        + (2 * C * hidden + B * C) * 4,
    )

    out = pl.pallas_call(
        kernel,
        out_shape=jax.ShapeDtypeStruct((B, C), jnp.float32),
        grid_spec=pltpu.PrefetchScalarGridSpec(
            num_scalar_prefetch=0,
            grid=(B // b_tile, n_hw),
            in_specs=[
                pl.BlockSpec((b_tile, C, hw_tile), lambda b, h: (b, 0, h)),
                pl.BlockSpec((C, hidden), lambda b, h: (0, 0)),
                pl.BlockSpec((hidden, C), lambda b, h: (0, 0)),
            ],
            out_specs=pl.BlockSpec((b_tile, C), lambda b, h: (b, 0)),
            scratch_shapes=[
                pltpu.VMEM((b_tile, C, 128), jnp.float32),   # lane-partial sum
                pltpu.VMEM((b_tile, C, 128), jnp.float32),   # lane-partial max
            ],
        ),
        compiler_params=pltpu.CompilerParams(
            dimension_semantics=("parallel", "arbitrary"),
            vmem_limit_bytes=vmem_limit,
        ),
        cost_estimate=cost,
    )(x3, w1_t, w2_t)

    return out.reshape(B, C, 1, 1)


def channel_attention_ref(x, w1, w2):
    """Pure-JAX reference matching the PyTorch forward."""
    xf = x.astype(jnp.float32)
    avg = jnp.mean(xf, axis=(2, 3))                       # (B, C)
    mx = jnp.max(xf, axis=(2, 3))                         # (B, C)
    w1m = w1[:, :, 0, 0].astype(jnp.float32)              # (hidden, C)
    w2m = w2[:, :, 0, 0].astype(jnp.float32)              # (C, hidden)

    def branch(p):
        h = jnp.maximum(p @ w1m.T, 0.0)                   # (B, hidden)
        return h @ w2m.T                                  # (B, C)

    out = jax.nn.sigmoid(branch(avg) + branch(mx))
    return out[:, :, None, None]


if __name__ == "__main__":
    key = jax.random.PRNGKey(0)
    kx, k1, k2, kx2 = jax.random.split(key, 4)

    # in_planes must be >= 16 (module hardcodes // 16).
    B, C = 2, 32
    hidden = C // 16
    w1 = jax.random.normal(k1, (hidden, C, 1, 1), dtype=jnp.float32) * 0.1
    w2 = jax.random.normal(k2, (C, hidden, 1, 1), dtype=jnp.float32) * 0.1

    # Case 1: auto tile sizing (whole HW in one block, batch-blocked).
    x = jax.random.normal(kx, (B, C, 16, 16), dtype=jnp.float32)
    out = jax.block_until_ready(channel_attention(x, w1, w2))
    ref = channel_attention_ref(x, w1, w2)
    assert out.shape == (B, C, 1, 1)
    assert jnp.allclose(out, ref, atol=1e-5, rtol=1e-5), "mismatch (auto)"

    # Case 2: explicit small tile -> multi-step HW reduction path.
    out2 = jax.block_until_ready(channel_attention(x, w1, w2, hw_tile=128))
    assert jnp.allclose(out2, ref, atol=1e-5, rtol=1e-5), "mismatch (tiled)"

    # Case 3: ragged spatial size (HW=130 -> padded to 256, masked last tile).
    xr = jax.random.normal(kx2, (B, C, 10, 13), dtype=jnp.float32)
    out_r = jax.block_until_ready(channel_attention(xr, w1, w2, hw_tile=128))
    ref_r = channel_attention_ref(xr, w1, w2)
    assert jnp.allclose(out_r, ref_r, atol=1e-5, rtol=1e-5), "mismatch (ragged)"

    # Case 4: bf16 input streamed natively, f32 accumulation in-kernel.
    xb = x.astype(jnp.bfloat16)
    out_b = jax.block_until_ready(channel_attention(xb, w1, w2))
    ref_b = channel_attention_ref(xb, w1, w2)
    assert jnp.allclose(out_b, ref_b, atol=2e-3, rtol=2e-3), "mismatch (bf16)"

    print("KERNEL_OK")
</pallas_src>

<mosaic_0001>
module attributes {stable_mosaic.version = 11 : i64} {
  func.func @_channel_attention_kernel(%arg0: i32, %arg1: i32, %arg2: memref<2x32x256xf32, #tpu.memory_space<vmem>>, %arg3: memref<32x2xf32, #tpu.memory_space<vmem>>, %arg4: memref<2x32xf32, #tpu.memory_space<vmem>>, %arg5: memref<2x32xf32, #tpu.memory_space<vmem>>, %arg6: memref<2x32x128xf32, #tpu.memory_space<vmem>>, %arg7: memref<2x32x128xf32, #tpu.memory_space<vmem>>) attributes {dimension_semantics = [#tpu.dimension_semantics<parallel>, #tpu.dimension_semantics<arbitrary>], iteration_bounds = array<i64: 1, 1>, scalar_prefetch = 0 : i64, scratch_operands = 2 : i64, tpu.core_type = #tpu.core_type<tc>, window_params = [{transform_indices = @transform_0, window_bounds = array<i64: 2, 32, 256>}, {pipeline_mode = #tpu.pipeline_mode<synchronous>, transform_indices = @transform_1, window_bounds = array<i64: 32, 2>}, {pipeline_mode = #tpu.pipeline_mode<synchronous>, transform_indices = @transform_2, window_bounds = array<i64: 2, 32>}, {transform_indices = @transform_3, window_bounds = array<i64: 2, 32>}]} {
    %c0_i32 = arith.constant 0 : i32
    %0 = arith.cmpi eq, %arg1, %c0_i32 : i32
    %1 = arith.extui %0 : i1 to i32
    %c0_i32_0 = arith.constant 0 : i32
    %2 = arith.cmpi ne, %1, %c0_i32_0 : i32
    scf.if %2 {
      %cst = arith.constant 0.000000e+00 : f32
      %17 = vector.broadcast %cst : f32 to vector<2x32x128xf32>
      %c0_17 = arith.constant 0 : index
      %c0_18 = arith.constant 0 : index
      %c0_19 = arith.constant 0 : index
      %18 = vector.load %arg6[%c0_17, %c0_18, %c0_19] : memref<2x32x128xf32, #tpu.memory_space<vmem>>, vector<2x32x128xf32>
      tpu.vector_store %arg6[%c0_17, %c0_18, %c0_19], %17 {strides = array<i32>} : memref<2x32x128xf32, #tpu.memory_space<vmem>>, vector<2x32x128xf32>,
      %cst_20 = arith.constant 0xFF800000 : f32
      %19 = vector.broadcast %cst_20 : f32 to vector<2x32x128xf32>
      %c0_21 = arith.constant 0 : index
      %c0_22 = arith.constant 0 : index
      %c0_23 = arith.constant 0 : index
      %20 = vector.load %arg7[%c0_21, %c0_22, %c0_23] : memref<2x32x128xf32, #tpu.memory_space<vmem>>, vector<2x32x128xf32>
      tpu.vector_store %arg7[%c0_21, %c0_22, %c0_23], %19 {strides = array<i32>} : memref<2x32x128xf32, #tpu.memory_space<vmem>>, vector<2x32x128xf32>,
    } else {
    }
    %c0 = arith.constant 0 : index
    %c0_1 = arith.constant 0 : index
    %c0_2 = arith.constant 0 : index
    %3 = vector.load %arg2[%c0, %c0_1, %c0_2] : memref<2x32x256xf32, #tpu.memory_space<vmem>>, vector<2x32x256xf32>
    %4 = vector.extract_strided_slice %3 {offsets = [0, 0, 0], sizes = [2, 32, 128], strides = [1, 1, 1]} : vector<2x32x256xf32> to vector<2x32x128xf32>
    %5 = vector.extract_strided_slice %3 {offsets = [0, 0, 128], sizes = [2, 32, 128], strides = [1, 1, 1]} : vector<2x32x256xf32> to vector<2x32x128xf32>
    %6 = arith.addf %4, %5 : vector<2x32x128xf32>
    %7 = arith.maximumf %4, %5 : vector<2x32x128xf32>
    %c0_3 = arith.constant 0 : index
    %c0_4 = arith.constant 0 : index
    %c0_5 = arith.constant 0 : index
    %8 = vector.load %arg6[%c0_3, %c0_4, %c0_5] : memref<2x32x128xf32, #tpu.memory_space<vmem>>, vector<2x32x128xf32>
    %9 = arith.addf %8, %6 : vector<2x32x128xf32>
    %c0_6 = arith.constant 0 : index
    %c0_7 = arith.constant 0 : index
    %c0_8 = arith.constant 0 : index
    %10 = vector.load %arg6[%c0_6, %c0_7, %c0_8] : memref<2x32x128xf32, #tpu.memory_space<vmem>>, vector<2x32x128xf32>
    tpu.vector_store %arg6[%c0_6, %c0_7, %c0_8], %9 {strides = array<i32>} : memref<2x32x128xf32, #tpu.memory_space<vmem>>, vector<2x32x128xf32>,
    %c0_9 = arith.constant 0 : index
    %c0_10 = arith.constant 0 : index
    %c0_11 = arith.constant 0 : index
    %11 = vector.load %arg7[%c0_9, %c0_10, %c0_11] : memref<2x32x128xf32, #tpu.memory_space<vmem>>, vector<2x32x128xf32>
    %12 = arith.maximumf %11, %7 : vector<2x32x128xf32>
    %c0_12 = arith.constant 0 : index
    %c0_13 = arith.constant 0 : index
    %c0_14 = arith.constant 0 : index
    %13 = vector.load %arg7[%c0_12, %c0_13, %c0_14] : memref<2x32x128xf32, #tpu.memory_space<vmem>>, vector<2x32x128xf32>
    tpu.vector_store %arg7[%c0_12, %c0_13, %c0_14], %12 {strides = array<i32>} : memref<2x32x128xf32, #tpu.memory_space<vmem>>, vector<2x32x128xf32>,
    %c0_i32_15 = arith.constant 0 : i32
    %14 = arith.cmpi eq, %arg1, %c0_i32_15 : i32
    %15 = arith.extui %14 : i1 to i32
    %c0_i32_16 = arith.constant 0 : i32
    %16 = arith.cmpi ne, %15, %c0_i32_16 : i32
    scf.if %16 {
      %c0_17 = arith.constant 0 : index
      %c0_18 = arith.constant 0 : index
      %c0_19 = arith.constant 0 : index
      %17 = vector.load %arg6[%c0_17, %c0_18, %c0_19] : memref<2x32x128xf32, #tpu.memory_space<vmem>>, vector<2x32x128xf32>
      %cst = arith.constant dense<0.000000e+00> : vector<2x32xf32>
      %18 = vector.multi_reduction <add>, %17, %cst [2] : vector<2x32x128xf32> to vector<2x32xf32>
      %cst_20 = arith.constant 3.906250e-03 : f32
      %19 = vector.broadcast %cst_20 : f32 to vector<2x32xf32>
      %20 = arith.mulf %18, %19 : vector<2x32xf32>
      %c0_21 = arith.constant 0 : index
      %c0_22 = arith.constant 0 : index
      %c0_23 = arith.constant 0 : index
      %21 = vector.load %arg7[%c0_21, %c0_22, %c0_23] : memref<2x32x128xf32, #tpu.memory_space<vmem>>, vector<2x32x128xf32>
      %cst_24 = arith.constant dense<0xFF800000> : vector<2x32xf32>
      %22 = vector.multi_reduction <maximumf>, %21, %cst_24 [2] : vector<2x32x128xf32> to vector<2x32xf32>
      %23 = tpu.concatenate %20, %22 in 0 : vector<2x32xf32>, vector<2x32xf32> -> vector<4x32xf32>
      %c0_25 = arith.constant 0 : index
      %c0_26 = arith.constant 0 : index
      %24 = vector.load %arg3[%c0_25, %c0_26] : memref<32x2xf32, #tpu.memory_space<vmem>>, vector<32x2xf32>
      %cst_27 = arith.constant dense<0.000000e+00> : vector<4x2xf32>
      %25 = tpu.matmul %23, %24, %cst_27 {dimension_numbers = #tpu.dot_dimension_numbers<[1], [0], [0], [1], [0, 0, 1, 1], [], []>} : vector<4x32xf32>, vector<32x2xf32>, vector<4x2xf32> -> vector<4x2xf32>
      %cst_28 = arith.constant 0.000000e+00 : f32
      %26 = vector.broadcast %cst_28 : f32 to vector<4x2xf32>
      %27 = arith.maximumf %25, %26 : vector<4x2xf32>
      %c0_29 = arith.constant 0 : index
      %c0_30 = arith.constant 0 : index
      %28 = vector.load %arg4[%c0_29, %c0_30] : memref<2x32xf32, #tpu.memory_space<vmem>>, vector<2x32xf32>
      %cst_31 = arith.constant dense<0.000000e+00> : vector<4x32xf32>
      %29 = tpu.matmul %27, %28, %cst_31 {dimension_numbers = #tpu.dot_dimension_numbers<[1], [0], [0], [1], [0, 0, 1, 1], [], []>} : vector<4x2xf32>, vector<2x32xf32>, vector<4x32xf32> -> vector<4x32xf32>
      %30 = vector.extract_strided_slice %29 {offsets = [0, 0], sizes = [2, 32], strides = [1, 1]} : vector<4x32xf32> to vector<2x32xf32>
      %31 = vector.extract_strided_slice %29 {offsets = [2, 0], sizes = [2, 32], strides = [1, 1]} : vector<4x32xf32> to vector<2x32xf32>
      %32 = arith.addf %30, %31 : vector<2x32xf32>
      %33 = arith.negf %32 : vector<2x32xf32>
      %34 = math.exp %33 : vector<2x32xf32>
      %cst_32 = arith.constant 1.000000e+00 : f32
      %35 = vector.broadcast %cst_32 : f32 to vector<2x32xf32>
      %36 = arith.addf %35, %34 : vector<2x32xf32>
      %37 = arith.divf %35, %36 : vector<2x32xf32>
      %c0_33 = arith.constant 0 : index
      %c0_34 = arith.constant 0 : index
      %38 = vector.load %arg5[%c0_33, %c0_34] : memref<2x32xf32, #tpu.memory_space<vmem>>, vector<2x32xf32>
      tpu.vector_store %arg5[%c0_33, %c0_34], %37 {strides = array<i32>} : memref<2x32xf32, #tpu.memory_space<vmem>>, vector<2x32xf32>,
    } else {
    }
    return
  }
  func.func @transform_0(%arg0: i32, %arg1: i32) -> (i32, i32, i32) {
    %c0_i32 = arith.constant 0 : i32
    %c0_i32_0 = arith.constant 0 : i32
    return %arg0, %c0_i32, %arg1 : i32, i32, i32
  }
  func.func @transform_1(%arg0: i32, %arg1: i32) -> (i32, i32) {
    %c0_i32 = arith.constant 0 : i32
    %c0_i32_0 = arith.constant 0 : i32
    %c0_i32_1 = arith.constant 0 : i32
    return %c0_i32, %c0_i32_0 : i32, i32
  }
  func.func @transform_2(%arg0: i32, %arg1: i32) -> (i32, i32) {
    %c0_i32 = arith.constant 0 : i32
    %c0_i32_0 = arith.constant 0 : i32
    %c0_i32_1 = arith.constant 0 : i32
    return %c0_i32, %c0_i32_0 : i32, i32
  }
  func.func @transform_3(%arg0: i32, %arg1: i32) -> (i32, i32) {
    %c0_i32 = arith.constant 0 : i32
    %c0_i32_0 = arith.constant 0 : i32
    return %arg0, %c0_i32 : i32, i32
  }
}

</mosaic_0001>

<bundles_post_ra>
// kernel: tpu_custom_call.1
= control target key start
LH: loop header
LB: loop body
LE: loop exit
PB: predicated region body
PF: predicated region fallthrough
CT: control target
= control target key end

     0   :  { %8 = vsyncpa [#allocation5], 0  ;;  %s470_s0 = inlined_call_operand.hbm [shape: f32[2,32,256], index: 0, kind: input, shape index: {}]   ;;  %s471_s1 = inlined_call_operand.vmem [shape: f32[32,2], index: 1, kind: input, shape index: {}]   ;;  %s472_s2 = inlined_call_operand.vmem [shape: f32[2,32], index: 2, kind: input, shape index: {}]   ;;  %s473_s3 = inlined_call_operand.hbm [shape: f32[2,32], index: 3, kind: output, shape index: {}]  }
   0x1   :  { %9 = vsyncpa [#allocation6], 0  ;;  %s14_s14 = sshll.u32 %s470_s0, 4  ;;  %s413_s15 = smov [#allocation4]   ;;  %s15_s14 = int_to_ptr.hbm [resolvable:$true] %s14_s14 }
   0x2   :  { %s16_s16 = sshll.u32 %s413_s15, 4  ;;  %s414_s17 = smov 256   ;;  %s17_s16 = int_to_ptr.vmem [resolvable:$true] %s16_s16 }
   0x3   :  { %s415_s18 = smov 16  }
   0x4   :  { %22 = dma.hbm_to_vmem [thread:$0]  %s15_s14, 2048, %s17_s16, [#allocation5], %s414_s17, %s414_s17, %s415_s18  }
   0x5   :  { %409 = dma.done.wait [#allocation5], 2048  }
   0x6   :  { %410 = vsyncadd [#allocation5], 4294965248  ;;  %v59_v0 = vld [vmem:[#allocation4 + $0x40] sm:$0xff]  ;;  %v60_v1 = vld [vmem:[#allocation4 + $0x48] sm:$0xff]  ;;  %v198_v45 = vlaneseq  ;;  %vm203_vm0 = vcmask 130112   ;;  %vm207_vm1 = vcmask 195712  }
   0x7   :  { %v51_v2 = vld [vmem:[#allocation4] sm:$0xff]  ;;  %v71_v3 = vadd.f32 %v60_v1, %v59_v0  ;;  %v52_v4 = vld [vmem:[#allocation4 + $0x8] sm:$0xff]  ;;  %v61_v9 = vld [vmem:[#allocation4 + $0x50] sm:$0xff]  ;;  %v79_v25 = vmax.f32 %v59_v0, %v60_v1  ;;  %vm211_vm2 = vcmask 261312   ;;  %vm220_vm3 = vcmask 1041409   ;;  %s339_s30 = sshll.u32 %s473_s3, 4  ;;  %s340_s30 = int_to_ptr.hbm [resolvable:$true] %s339_s30 }
   0x8   :  { %v55_v5 = vld [vmem:[#allocation4 + $0x20] sm:$0xff]  ;;  %v56_v6 = vld [vmem:[#allocation4 + $0x28] sm:$0xff]  ;;  %v67_v7 = vadd.f32 %v52_v4, %v51_v2  ;;  %v62_v10 = vld [vmem:[#allocation4 + $0x58] sm:$0xff]  ;;  %v75_v24 = vmax.f32 %v51_v2, %v52_v4  ;;  %v199_v49 = vand.u32 127, %v198_v45  ;;  %vm245_vm4 = vcmask 1043459  }
   0x9   :  { %v69_v8 = vadd.f32 %v56_v6, %v55_v5  ;;  %150 = vadd.xlane.f32.xlu1 %v71_v3  ;;  %v53_v11 = vld [vmem:[#allocation4 + $0x10] sm:$0xff]  ;;  %v54_v12 = vld [vmem:[#allocation4 + $0x18] sm:$0xff]  ;;  %v63_v13 = vld [vmem:[#allocation4 + $0x60] sm:$0xff]  ;;  %v72_v15 = vadd.f32 %v62_v10, %v61_v9  ;;  %v80_v27 = vmax.f32 %v61_v9, %v62_v10  ;;  %v77_v29 = vmax.f32 %v55_v5, %v56_v6 }
   0xa   :  { %142 = vadd.xlane.f32.xlu0 %v67_v7  ;;  %v64_v14 = vld [vmem:[#allocation4 + $0x68] sm:$0xff]  ;;  %v68_v16 = vadd.f32 %v54_v12, %v53_v11  ;;  %v65_v18 = vld [vmem:[#allocation4 + $0x70] sm:$0xff]  ;;  %v66_v19 = vld [vmem:[#allocation4 + $0x78] sm:$0xff]  ;;  %v76_v26 = vmax.f32 %v53_v11, %v54_v12  ;;  %v201_v51 = vadd.s32 4294967288, %v199_v49  ;;  %v205_v55 = vadd.s32 4294967280, %v199_v49 }
   0xb   :  { %146 = vadd.xlane.f32.xlu2 %v69_v8  ;;  %v73_v17 = vadd.f32 %v64_v14, %v63_v13  ;;  %v57_v20 = vld [vmem:[#allocation4 + $0x30] sm:$0xff]  ;;  %v58_v21 = vld [vmem:[#allocation4 + $0x38] sm:$0xff]  ;;  %v74_v22 = vadd.f32 %v66_v19, %v65_v18  ;;  %v81_v28 = vmax.f32 %v63_v13, %v64_v14  ;;  %v82_v31 = vmax.f32 %v65_v18, %v66_v19  ;;  %v251_v40 = vld [vmem:[%s471_s1 + $0x8] sm:$0xff] }
   0xc   :  { %v70_v23 = vadd.f32 %v58_v21, %v57_v20  ;;  %v78_v30 = vmax.f32 %v57_v20, %v58_v21  ;;  %v253_v35 = vld [vmem:[%s471_s1 + $0x18] sm:$0xff]  ;;  %v252_v39 = vld [vmem:[%s471_s1 + $0x10] sm:$0xff]  ;;  %v250_v41 = vld [vmem:[%s471_s1] sm:$0xff]  ;;  %v209_v59 = vadd.s32 4294967272, %v199_v49  ;;  %vm248_vm5 = vcmask 1041408  }
   0xd   :  { %270 = vmatpush.msra.mxu0 %v253_v35  ;;  %vm254_vm6 = vcmask 261120   ;;  %vm280_vm7 = vcmask 15360   ;;  %vm330_vm11 = vcmask 254976  }
   0xf   :  { %271 = vmatpush.msra.mxu0 %v252_v39 }
  0x11   :  { %152 = vadd.xlane.f32.xlu1 %v72_v15  ;;  %272 = vmatpush.msra.mxu0 %v251_v40 }
  0x12   :  { %144 = vadd.xlane.f32.xlu0 %v68_v16 }
  0x13   :  { %154 = vadd.xlane.f32.xlu2 %v73_v17  ;;  %273 = vmatpush.msra.mxu0 %v250_v41 }
  0x19   :  { %156 = vadd.xlane.f32.xlu1 %v74_v22 }
  0x1a   :  { %148 = vadd.xlane.f32.xlu0 %v70_v23 }
  0x1b   :  { %174 = vmax.xlane.f32.xlu2 %v75_v24 }
  0x21   :  { %182 = vmax.xlane.f32.xlu1 %v79_v25 }
  0x22   :  { %176 = vmax.xlane.f32.xlu0 %v76_v26 }
  0x23   :  { %184 = vmax.xlane.f32.xlu2 %v80_v27 }
  0x29   :  { %186 = vmax.xlane.f32.xlu1 %v81_v28 }
  0x2a   :  { %178 = vmax.xlane.f32.xlu0 %v77_v29 }
  0x2b   :  { %180 = vmax.xlane.f32.xlu2 %v78_v30 }
  0x32   :  { %188 = vmax.xlane.f32.xlu0 %v82_v31 }
  0x7c   :  { %v151_v32 = vpop.xlane.xlu1 %150 }
  0x7d   :  { %v143_v33 = vpop.xlane.xlu0 %142  ;;  %v162_v50 = vmul.f32 0.00390625, %v151_v32  ;;  %v279_v32 = vld [vmem:[%s472_s2] sm:$0x3]  ;;  %s416_s2 = smov [#allocation7]  }
  0x7e   :  { %v147_v34 = vpop.xlane.xlu2 %146  ;;  %v158_v54 = vmul.f32 0.00390625, %v143_v33  ;;  %350 = vmatpush.msk.msra.mxu1 %vm248_vm5, %v279_v32  ;;  %s337_s27 = sshll.u32 %s416_s2, 4  ;;  %s338_s27 = int_to_ptr.vmem [resolvable:$true] %s337_s27 }
  0x7f   :  { %v213_v56 = vperm.slane %v162_v50, %v199_v49  ;;  %v160_v57 = vmul.f32 0.00390625, %v147_v34 }
  0x80   :  { %v200_v1 = vperm.slane %v158_v54, %v199_v49 }
  0x81   :  { %v206_v7 = vperm.slane %v160_v57, %v205_v55 }
  0x84   :  { %v153_v36 = vpop.xlane.xlu1 %152 }
  0x85   :  { %v145_v37 = vpop.xlane.xlu0 %144  ;;  %v163_v52 = vmul.f32 0.00390625, %v153_v36 }
  0x86   :  { %v155_v38 = vpop.xlane.xlu2 %154  ;;  %v159_v53 = vmul.f32 0.00390625, %v145_v37 }
  0x87   :  { %v164_v58 = vmul.f32 0.00390625, %v155_v38  ;;  %v214_v61 = vperm.slane %v163_v52, %v201_v51 }
  0x88   :  { %v202_v62 = vperm.slane %v159_v53, %v201_v51 }
  0x89   :  { %v216_v8 = vperm.slane %v164_v58, %v205_v55  ;;  %v215_v11 = vsel %vm203_vm0, %v214_v61, %v213_v56 }
  0x8a   :  { %v204_v12 = vsel %vm203_vm0, %v202_v62, %v200_v1 }
  0x8b   :  { %v217_v19 = vsel %vm207_vm1, %v216_v8, %v215_v11  ;;  %v208_v22 = vsel %vm207_vm1, %v206_v7, %v204_v12 }
  0x8c   :  { %v157_v42 = vpop.xlane.xlu1 %156 }
  0x8d   :  { %v149_v43 = vpop.xlane.xlu0 %148  ;;  %v165_v63 = vmul.f32 0.00390625, %v157_v42 }
  0x8e   :  { %v175_v44 = vpop.xlane.xlu2 %174  ;;  %v161_v0 = vmul.f32 0.00390625, %v149_v43 }
  0x8f   :  { %v231_v2 = vperm.slane %v175_v44, %v199_v49  ;;  %v218_v13 = vperm.slane %v165_v63, %v209_v59 }
  0x90   :  { %v210_v14 = vperm.slane %v161_v0, %v209_v59 }
  0x91   :  { %v219_v25 = vsel %vm211_vm2, %v218_v13, %v217_v19 }
  0x92   :  { %v212_v24 = vsel %vm211_vm2, %v210_v14, %v208_v22 }
  0x93   :  { %v221_v29 = vsel %vm220_vm3, %v219_v25, %v212_v24 }
  0x94   :  { %v183_v47 = vpop.xlane.xlu1 %182 }
  0x95   :  { %v177_v46 = vpop.xlane.xlu0 %176  ;;  %v238_v3 = vperm.slane %v183_v47, %v199_v49 }
  0x96   :  { %v185_v48 = vpop.xlane.xlu2 %184  ;;  %v232_v4 = vperm.slane %v177_v46, %v201_v51 }
  0x97   :  { %v239_v5 = vperm.slane %v185_v48, %v201_v51 }
  0x98   :  { %v233_v16 = vsel %vm203_vm0, %v232_v4, %v231_v2 }
  0x99   :  { %v240_v17 = vsel %vm203_vm0, %v239_v5, %v238_v3 }
  0x9c   :  { %v187_v6 = vpop.xlane.xlu1 %186 }
  0x9d   :  { %v179_v60 = vpop.xlane.xlu0 %178  ;;  %v241_v15 = vperm.slane %v187_v6, %v205_v55 }
  0x9e   :  { %v234_v9 = vperm.slane %v179_v60, %v205_v55  ;;  %v181_v10 = vpop.xlane.xlu2 %180 }
  0x9f   :  { %v236_v18 = vperm.slane %v181_v10, %v209_v59  ;;  %v242_v26 = vsel %vm207_vm1, %v241_v15, %v240_v17 }
  0xa0   :  { %v235_v20 = vsel %vm207_vm1, %v234_v9, %v233_v16 }
  0xa1   :  { %v237_v27 = vsel %vm211_vm2, %v236_v18, %v235_v20 }
  0xa5   :  { %v189_v21 = vpop.xlane.xlu0 %188 }
  0xa6   :  { %v243_v23 = vperm.slane %v189_v21, %v209_v59 }
  0xa8   :  { %v244_v28 = vsel %vm211_vm2, %v243_v23, %v242_v26 }
  0xa9   :  { %v246_v30 = vsel %vm245_vm4, %v244_v28, %v237_v27 }
  0xaa   :  { %v249_v31 = vsel %vm248_vm5, %v221_v29, %v246_v30 }
  0xab   :  { %349 = vmatmul.msk.f32.vlgmr.msra.gmra.mxu0 %vm254_vm6, %v249_v31 }
 0x128   :  { %v275_v33 = vpop.f32.mrf.mxu0 }
 0x129   :  { %v278_v34 = vmax.f32 %v275_v33, 0.0 }
 0x12b   :  { %351 = vmatmul.msk.f32.vlgmr.msra.gmra.mxu1 %vm280_vm7, %v278_v34 }
 0x1a8   :  { %v304_v35 = vpop.f32.mrf.mxu1 }
 0x1a9   :  { %v308_v36 = vrot.slane %v304_v35, 2 }
 0x1ab   :  { %v310_v37 = vadd.f32 %v308_v36, %v304_v35 }
 0x1ad   :  { %v352_v38 = vmul.f32 -1.442695, %v310_v37 }
 0x1af   :  { %357 = vpow2.f32 %v352_v38 }
 0x1b5   :  { %v358_v39 = vpop.eup %357 }
 0x1b6   :  { %v314_v40 = vadd.f32 1.0, %v358_v39 }
 0x1b8   :  { %359 = vrcp.f32 %v314_v40  ;;  %v326_v44 = vand.u32 2147483648, %v314_v40  ;;  %v324_v46 = vand.u32 2147483647, %v314_v40  ;;  %vm320_vm9 = vweird.f32 %v314_v40 }
 0x1ba   :  { %v327_v48 = vor.u32 1.1754944e-38, %v326_v44  ;;  %vm325_vm12 = vcmp.eq.f32.partialorder %v324_v46, 8.507059e+37 }
 0x1be   :  { %v360_v41 = vpop.eup %359 }
 0x1bf   :  { %v316_v42 = vmul.f32 %v360_v41, %v314_v40  ;;  %vm321_vm8 = vweird.f32 %v360_v41 }
 0x1c0   :  { %vm322_vm10 = vmor %vm320_vm9, %vm321_vm8 }
 0x1c1   :  { %v317_v43 = vsub.f32 1.0, %v316_v42 }
 0x1c3   :  { %v318_v45 = vmul.f32 %v360_v41, %v317_v43 }
 0x1c5   :  { %v319_v47 = vadd.f32 %v360_v41, %v318_v45 }
 0x1c7   :  { %v323_v49 = vsel %vm322_vm10, %v360_v41, %v319_v47 }
 0x1c8   :  { %v328_v50 = vsel %vm325_vm12, %v327_v48, %v323_v49 }
 0x1c9   :  { %331 = vst.msk [vmem:[#allocation7] sm:$0x3] %vm330_vm11, %v328_v50 }
 0x1ca   :  { %342 = dma.vmem_to_hbm [thread:$0]  %s338_s27, 32, %s340_s30, [#allocation6]  }
 0x1cb   :  { %411 = dma.done.wait [#allocation6], 32  }
 0x1cc   :  { %412 = vsyncadd [#allocation6], 4294967264 }
 0x1cd   :  { %347 = vsyncpa [#allocation5], 1 }
 0x1ce   :  { %348 = vsyncpa [#allocation6], 1 }

</bundles_post_ra>
